<compile_context>
chip_gen: v7x
topology: tpu7x:2x2x1
jax: 0.10.0
libtpu: 0.0.40
codegen_flags: <defaults>
</compile_context>

<pallas_src>
import numpy as np
import jax
import jax.numpy as jnp
from jax.experimental import pallas as pl
from jax.experimental.pallas import tpu as pltpu


# ---------------------------------------------------------------------------
# Fused kernel: conv1 + ReLU -> conv2 + ReLU -> global avg pool -> linear head
# ---------------------------------------------------------------------------
def _make_kernel(H: int):
    """Build the fused forward kernel with the (static) image height H closed over.

    Kernel operands (all whole-array VMEM blocks, lane-dense 2D/3D slabs):
      x_ref   : (B*H, W*Cin)      f32   NHWC input slab (one row per (b, h))
      w1_ref  : (3, W*Cin, W*C1)  bf16  banded conv1 weight, one band per h-tap
      b1_ref  : (1, W*C1)         f32   conv1 bias tiled over w
      w2_ref  : (3, W*C1, W*C2)   bf16  banded conv2 weight
      b2_ref  : (1, W*C2)         f32
      pool_ref: (B, B*H)          f32   row selector summing the H rows of each batch
      wh_ref  : (W*C2, ncls)      f32   head weight with w-sum and 1/(H*W) folded in
      bh_ref  : (1, ncls)         f32
      o_ref   : (B, ncls)         f32
    """

    def kernel(x_ref, w1_ref, b1_ref, w2_ref, b2_ref, pool_ref, wh_ref, bh_ref, o_ref):
        f32 = jnp.float32
        R = x_ref.shape[0]                                   # B*H rows (static)

        # Border masks: rows whose h-1 (resp. h+1) neighbour falls outside the image /
        # into the next batch must see zeros ('same' zero padding along h).
        row = jax.lax.broadcasted_iota(jnp.int32, (R, 1), 0)
        h = row % H
        is_first = h == 0
        is_last = h == H - 1

        def h_shifted(v):
            # v[h-1] / v[h+1] via XLU sublane rotations (otherwise-idle slot, O(B*H))
            # instead of the previous O((B*H)^2) selector matmuls on the MXU.
            vm = jnp.where(is_first, 0.0, pltpu.roll(v, 1, axis=0))      # row h-1
            vp = jnp.where(is_last, 0.0, pltpu.roll(v, R - 1, axis=0))   # row h+1
            return vm, vp

        def conv3x3_relu(v, w_ref, b_ref):
            # 'Same' 3x3 conv as three band matmuls (K = W*Cin each); the 3 w-taps and
            # the w-direction zero padding are folded into the banded weight.  Per-band
            # accumulation (no (R, 3*W*Cin) lane-concat slab); bf16 weights upcast once.
            vm, vp = h_shifted(v)
            acc = jnp.dot(vm, w_ref[0].astype(f32), preferred_element_type=f32)
            acc = acc + jnp.dot(v, w_ref[1].astype(f32), preferred_element_type=f32)
            acc = acc + jnp.dot(vp, w_ref[2].astype(f32), preferred_element_type=f32)
            return jnp.maximum(acc + b_ref[...], 0.0)

        s1 = conv3x3_relu(x_ref[...], w1_ref, b1_ref)        # (B*H, W*C1)
        s2 = conv3x3_relu(s1, w2_ref, b2_ref)                # (B*H, W*C2)

        # Global average pool + linear head: h-sum via the tiny pool selector, the w-sum
        # and the 1/(H*W) normalization are folded into wh (built once in prepare_params).
        pooled = jnp.dot(pool_ref[...], s2, preferred_element_type=f32)  # (B, W*C2)
        o_ref[...] = (jnp.dot(pooled, wh_ref[...], preferred_element_type=f32)
                      + bh_ref[...])

    return kernel


# ---------------------------------------------------------------------------
# One-time frozen-parameter repacking (hoisted out of the per-call forward)
# ---------------------------------------------------------------------------
def _banded_conv_weight(w_oihw, W):
    """(Cout, Cin, 3, 3) -> (3, W*Cin, W*Cout): one banded matrix per h-tap.

    Band kh, row index = wi*Cin + ci, col index = wo*Cout + co.
    Entry = w[co, ci, kh, kw] with kw = wi - wo + 1 when 0 <= kw < 3, else 0
    (the zeros implement the 'same' zero padding along w).
    """
    Cout, Cin, KH, KW = w_oihw.shape
    w_t = jnp.transpose(w_oihw, (2, 3, 1, 0))                 # (kh, kw, Cin, Cout)
    wi = jnp.arange(W)[:, None]
    wo = jnp.arange(W)[None, :]
    kw = wi - wo + 1                                          # (W, W)
    valid = (kw >= 0) & (kw < KW)
    gathered = w_t[:, jnp.clip(kw, 0, KW - 1)]                # (kh, wi, wo, Cin, Cout)
    band = jnp.where(valid[None, :, :, None, None], gathered, 0.0)
    band = jnp.transpose(band, (0, 1, 3, 2, 4))               # (kh, wi, Cin, wo, Cout)
    return band.reshape(KH, W * Cin, W * Cout)


def prepare_params(params, B, H, W):
    """One-time repack of the frozen backbone + head into kernel-ready slabs.

    These are pure functions of the frozen parameters and the static geometry, so they
    are computed ONCE here (not inside the per-call jitted forward, which previously
    re-emitted the whole gather/transpose/tile chain on every call).
    The banded conv weights are stored in bf16 (halves weight DMA / VMEM residency);
    the frozen backbone tolerates bf16 weight precision (verified below vs. reference).
    """
    w1 = _banded_conv_weight(params["conv1_w"], W).astype(jnp.bfloat16)  # (3, W*Cin, W*C1)
    b1 = jnp.tile(params["conv1_b"], W)[None, :].astype(jnp.float32)     # (1, W*C1)
    w2 = _banded_conv_weight(params["conv2_w"], W).astype(jnp.bfloat16)  # (3, W*C1, W*C2)
    b2 = jnp.tile(params["conv2_b"], W)[None, :].astype(jnp.float32)     # (1, W*C2)
    wh = (jnp.tile(params["lin_w"].T, (W, 1)) / float(H * W)).astype(jnp.float32)
    bh = params["lin_b"][None, :].astype(jnp.float32)

    # Pool selector: sums the H rows of each batch (tiny (B, B*H); review: low priority
    # to replace — at large B switch to an in-kernel reshape(B, H, W*C2) + sum(axis=1)).
    r = np.arange(B * H)
    pool = (np.arange(B)[:, None] == (r[None, :] // H)).astype(np.float32)

    return dict(w1=w1, b1=b1, w2=w2, b2=b2, wh=wh, bh=bh, pool=jnp.asarray(pool))


# ---------------------------------------------------------------------------
# Per-call forward: only the input layout transform + the single fused pallas_call
# ---------------------------------------------------------------------------
@jax.jit
def cnn_fixed_predictor_forward(packed, x_nchw):
    """Forward of CNNFixedPredictor. `packed` comes from prepare_params(); x is NCHW."""
    B, Cin, H, W = x_nchw.shape
    ncls = packed["bh"].shape[-1]

    # NCHW -> NHWC, flattened to one lane-dense (B*H, W*Cin) slab (the only per-call
    # wrapper op); the h-direction im2col now happens inside the kernel.
    x_slab = (jnp.transpose(x_nchw, (0, 2, 3, 1))
              .astype(jnp.float32)
              .reshape(B * H, W * Cin))

    vmem = pl.BlockSpec(memory_space=pltpu.MemorySpace.VMEM)  # whole-array VMEM blocks
    return pl.pallas_call(
        _make_kernel(H),
        out_shape=jax.ShapeDtypeStruct((B, ncls), jnp.float32),
        in_specs=[vmem] * 8,
        out_specs=vmem,
    )(x_slab, packed["w1"], packed["b1"], packed["w2"], packed["b2"],
      packed["pool"], packed["wh"], packed["bh"])


# ---------------------------------------------------------------------------
# Pure-JAX reference (for correctness check)
# ---------------------------------------------------------------------------
def reference_forward(params, x_nchw, *, bf16_backbone_weights=False):
    def maybe_round(w):
        # Match the deployed precision of the frozen backbone weights (bf16 storage).
        return (w.astype(jnp.bfloat16).astype(jnp.float32)
                if bf16_backbone_weights else w)

    x = jnp.transpose(x_nchw, (0, 2, 3, 1))
    for wn, bn in (("conv1_w", "conv1_b"), ("conv2_w", "conv2_b")):
        w = jnp.transpose(maybe_round(params[wn]), (2, 3, 1, 0))   # OIHW -> HWIO
        x = jax.lax.conv_general_dilated(
            x, w, window_strides=(1, 1), padding="SAME",
            dimension_numbers=("NHWC", "HWIO", "NHWC"))
        x = jax.nn.relu(x + params[bn])
    pooled = x.mean(axis=(1, 2))
    return pooled @ params["lin_w"].T + params["lin_b"]


# ---------------------------------------------------------------------------
# Main
# ---------------------------------------------------------------------------
if __name__ == "__main__":
    B, C_IN, H, W = 2, 4, 16, 16
    C1, NUM_FEATURES, NUM_CLASSES = 8, 16, 2

    key = jax.random.PRNGKey(0)
    ks = jax.random.split(key, 7)
    params = {
        # frozen backbone params (PyTorch OIHW conv layout)
        "conv1_w": 0.1 * jax.random.normal(ks[0], (C1, C_IN, 3, 3), jnp.float32),
        "conv1_b": 0.1 * jax.random.normal(ks[1], (C1,), jnp.float32),
        "conv2_w": 0.1 * jax.random.normal(ks[2], (NUM_FEATURES, C1, 3, 3), jnp.float32),
        "conv2_b": 0.1 * jax.random.normal(ks[3], (NUM_FEATURES,), jnp.float32),
        # trainable head: Linear(num_features, num_classes), PyTorch (out, in) layout
        "lin_w": 0.1 * jax.random.normal(ks[4], (NUM_CLASSES, NUM_FEATURES), jnp.float32),
        "lin_b": 0.1 * jax.random.normal(ks[5], (NUM_CLASSES,), jnp.float32),
    }
    x = jax.random.normal(ks[6], (B, C_IN, H, W), jnp.float32)   # NCHW, as in PyTorch

    # One-time repack of the frozen parameters (hoisted out of the hot path).
    packed = prepare_params(params, B=B, H=H, W=W)

    out = cnn_fixed_predictor_forward(packed, x)
    out = jax.block_until_ready(out)
    assert out.shape == (B, NUM_CLASSES), out.shape

    # Kernel correctness at matched (bf16 frozen-weight) precision: tight tolerance.
    ref_bf16w = reference_forward(params, x, bf16_backbone_weights=True)
    assert jnp.allclose(out, ref_bf16w, rtol=1e-3, atol=1e-3), (out, ref_bf16w)

    # Semantics vs. the full-f32 PyTorch module: only bf16 weight-storage rounding apart.
    ref_f32 = reference_forward(params, x)
    assert jnp.allclose(out, ref_f32, rtol=1e-2, atol=1e-2), (out, ref_f32)

    print("KERNEL_OK")
</pallas_src>

<mosaic_0001>
module attributes {stable_mosaic.version = 11 : i64} {
  func.func @kernel(%arg0: memref<32x64xf32, #tpu.memory_space<vmem>>, %arg1: memref<3x64x128xbf16, #tpu.memory_space<vmem>>, %arg2: memref<1x128xf32, #tpu.memory_space<vmem>>, %arg3: memref<3x128x256xbf16, #tpu.memory_space<vmem>>, %arg4: memref<1x256xf32, #tpu.memory_space<vmem>>, %arg5: memref<2x32xf32, #tpu.memory_space<vmem>>, %arg6: memref<256x2xf32, #tpu.memory_space<vmem>>, %arg7: memref<1x2xf32, #tpu.memory_space<vmem>>, %arg8: memref<2x2xf32, #tpu.memory_space<vmem>>) attributes {dimension_semantics = [], scalar_prefetch = 0 : i64, scratch_operands = 0 : i64, tpu.core_type = #tpu.core_type<tc>} {
    %0 = tpu.iota {dimensions = array<i32: 0>} : vector<32x1xi32>
    %c16_i32 = arith.constant 16 : i32
    %c0_i32 = arith.constant 0 : i32
    %1 = arith.cmpi eq, %c16_i32, %c0_i32 : i32
    %c1_i32 = arith.constant 1 : i32
    %2 = arith.select %1, %c1_i32, %c16_i32 : i32
    %3 = vector.broadcast %2 : i32 to vector<32x1xi32>
    %4 = arith.remsi %0, %3 : vector<32x1xi32>
    %c0_i32_0 = arith.constant 0 : i32
    %5 = vector.broadcast %c0_i32_0 : i32 to vector<32x1xi32>
    %6 = arith.cmpi ne, %4, %5 : vector<32x1xi32>
    %c0_i32_1 = arith.constant 0 : i32
    %7 = vector.broadcast %c0_i32_1 : i32 to vector<32x1xi32>
    %8 = arith.cmpi slt, %4, %7 : vector<32x1xi32>
    %c0_i32_2 = arith.constant 0 : i32
    %9 = arith.cmpi slt, %2, %c0_i32_2 : i32
    %10 = vector.broadcast %9 : i1 to vector<32x1xi1>
    %11 = vector.broadcast %10 : vector<32x1xi1> to vector<32x1xi1>
    %12 = arith.xori %8, %11 : vector<32x1xi1>
    %13 = arith.andi %12, %6 : vector<32x1xi1>
    %14 = vector.broadcast %2 : i32 to vector<32x1xi32>
    %15 = arith.addi %4, %14 : vector<32x1xi32>
    %16 = arith.select %13, %15, %4 : vector<32x1xi1>, vector<32x1xi32>
    %c0_i32_3 = arith.constant 0 : i32
    %17 = vector.broadcast %c0_i32_3 : i32 to vector<32x1xi32>
    %18 = arith.cmpi eq, %16, %17 : vector<32x1xi32>
    %c15_i32 = arith.constant 15 : i32
    %19 = vector.broadcast %c15_i32 : i32 to vector<32x1xi32>
    %20 = arith.cmpi eq, %16, %19 : vector<32x1xi32>
    %c0 = arith.constant 0 : index
    %c0_4 = arith.constant 0 : index
    %21 = vector.load %arg0[%c0, %c0_4] : memref<32x64xf32, #tpu.memory_space<vmem>>, vector<32x64xf32>
    %c1_i32_5 = arith.constant 1 : i32
    %22 = tpu.dynamic_rotate %21 by %c1_i32_5 dim 0 : vector<32x64xf32>, i32 -> vector<32x64xf32>
    %cst = arith.constant 0.000000e+00 : f32
    %23 = vector.shape_cast %18 : vector<32x1xi1> to vector<32x1xi1>
    %24 = vector.broadcast %23 : vector<32x1xi1> to vector<32x64xi1>
    %25 = vector.broadcast %cst : f32 to vector<32x64xf32>
    %26 = arith.select %24, %25, %22 : vector<32x64xi1>, vector<32x64xf32>
    %c31_i32 = arith.constant 31 : i32
    %27 = tpu.dynamic_rotate %21 by %c31_i32 dim 0 : vector<32x64xf32>, i32 -> vector<32x64xf32>
    %cst_6 = arith.constant 0.000000e+00 : f32
    %28 = vector.shape_cast %20 : vector<32x1xi1> to vector<32x1xi1>
    %29 = vector.broadcast %28 : vector<32x1xi1> to vector<32x64xi1>
    %30 = vector.broadcast %cst_6 : f32 to vector<32x64xf32>
    %31 = arith.select %29, %30, %27 : vector<32x64xi1>, vector<32x64xf32>
    %c0_7 = arith.constant 0 : index
    %c0_8 = arith.constant 0 : index
    %c0_9 = arith.constant 0 : index
    %32 = vector.load %arg1[%c0_7, %c0_8, %c0_9] : memref<3x64x128xbf16, #tpu.memory_space<vmem>>, vector<1x64x128xbf16>
    %33 = vector.shape_cast %32 : vector<1x64x128xbf16> to vector<64x128xbf16>
    %34 = arith.extf %33 : vector<64x128xbf16> to vector<64x128xf32>
    %cst_10 = arith.constant dense<0.000000e+00> : vector<32x128xf32>
    %35 = tpu.matmul %26, %34, %cst_10 {dimension_numbers = #tpu.dot_dimension_numbers<[1], [0], [0], [1], [0, 0, 1, 1], [], []>} : vector<32x64xf32>, vector<64x128xf32>, vector<32x128xf32> -> vector<32x128xf32>
    %c1 = arith.constant 1 : index
    %c0_11 = arith.constant 0 : index
    %c0_12 = arith.constant 0 : index
    %36 = vector.load %arg1[%c1, %c0_11, %c0_12] : memref<3x64x128xbf16, #tpu.memory_space<vmem>>, vector<1x64x128xbf16>
    %37 = vector.shape_cast %36 : vector<1x64x128xbf16> to vector<64x128xbf16>
    %38 = arith.extf %37 : vector<64x128xbf16> to vector<64x128xf32>
    %cst_13 = arith.constant dense<0.000000e+00> : vector<32x128xf32>
    %39 = tpu.matmul %21, %38, %cst_13 {dimension_numbers = #tpu.dot_dimension_numbers<[1], [0], [0], [1], [0, 0, 1, 1], [], []>} : vector<32x64xf32>, vector<64x128xf32>, vector<32x128xf32> -> vector<32x128xf32>
    %40 = arith.addf %35, %39 : vector<32x128xf32>
    %c2 = arith.constant 2 : index
    %c0_14 = arith.constant 0 : index
    %c0_15 = arith.constant 0 : index
    %41 = vector.load %arg1[%c2, %c0_14, %c0_15] : memref<3x64x128xbf16, #tpu.memory_space<vmem>>, vector<1x64x128xbf16>
    %42 = vector.shape_cast %41 : vector<1x64x128xbf16> to vector<64x128xbf16>
    %43 = arith.extf %42 : vector<64x128xbf16> to vector<64x128xf32>
    %cst_16 = arith.constant dense<0.000000e+00> : vector<32x128xf32>
    %44 = tpu.matmul %31, %43, %cst_16 {dimension_numbers = #tpu.dot_dimension_numbers<[1], [0], [0], [1], [0, 0, 1, 1], [], []>} : vector<32x64xf32>, vector<64x128xf32>, vector<32x128xf32> -> vector<32x128xf32>
    %45 = arith.addf %40, %44 : vector<32x128xf32>
    %c0_17 = arith.constant 0 : index
    %c0_18 = arith.constant 0 : index
    %46 = vector.load %arg2[%c0_17, %c0_18] : memref<1x128xf32, #tpu.memory_space<vmem>>, vector<1x128xf32>
    %47 = vector.broadcast %46 : vector<1x128xf32> to vector<32x128xf32>
    %48 = arith.addf %45, %47 : vector<32x128xf32>
    %cst_19 = arith.constant 0.000000e+00 : f32
    %49 = vector.broadcast %cst_19 : f32 to vector<32x128xf32>
    %50 = arith.maximumf %48, %49 : vector<32x128xf32>
    %c1_i32_20 = arith.constant 1 : i32
    %51 = tpu.dynamic_rotate %50 by %c1_i32_20 dim 0 : vector<32x128xf32>, i32 -> vector<32x128xf32>
    %cst_21 = arith.constant 0.000000e+00 : f32
    %52 = vector.shape_cast %18 : vector<32x1xi1> to vector<32x1xi1>
    %53 = vector.broadcast %52 : vector<32x1xi1> to vector<32x128xi1>
    %54 = vector.broadcast %cst_21 : f32 to vector<32x128xf32>
    %55 = arith.select %53, %54, %51 : vector<32x128xi1>, vector<32x128xf32>
    %c31_i32_22 = arith.constant 31 : i32
    %56 = tpu.dynamic_rotate %50 by %c31_i32_22 dim 0 : vector<32x128xf32>, i32 -> vector<32x128xf32>
    %cst_23 = arith.constant 0.000000e+00 : f32
    %57 = vector.shape_cast %20 : vector<32x1xi1> to vector<32x1xi1>
    %58 = vector.broadcast %57 : vector<32x1xi1> to vector<32x128xi1>
    %59 = vector.broadcast %cst_23 : f32 to vector<32x128xf32>
    %60 = arith.select %58, %59, %56 : vector<32x128xi1>, vector<32x128xf32>
    %c0_24 = arith.constant 0 : index
    %c0_25 = arith.constant 0 : index
    %c0_26 = arith.constant 0 : index
    %61 = vector.load %arg3[%c0_24, %c0_25, %c0_26] : memref<3x128x256xbf16, #tpu.memory_space<vmem>>, vector<1x128x256xbf16>
    %62 = vector.shape_cast %61 : vector<1x128x256xbf16> to vector<128x256xbf16>
    %63 = arith.extf %62 : vector<128x256xbf16> to vector<128x256xf32>
    %cst_27 = arith.constant dense<0.000000e+00> : vector<32x256xf32>
    %64 = tpu.matmul %55, %63, %cst_27 {dimension_numbers = #tpu.dot_dimension_numbers<[1], [0], [0], [1], [0, 0, 1, 1], [], []>} : vector<32x128xf32>, vector<128x256xf32>, vector<32x256xf32> -> vector<32x256xf32>
    %c1_28 = arith.constant 1 : index
    %c0_29 = arith.constant 0 : index
    %c0_30 = arith.constant 0 : index
    %65 = vector.load %arg3[%c1_28, %c0_29, %c0_30] : memref<3x128x256xbf16, #tpu.memory_space<vmem>>, vector<1x128x256xbf16>
    %66 = vector.shape_cast %65 : vector<1x128x256xbf16> to vector<128x256xbf16>
    %67 = arith.extf %66 : vector<128x256xbf16> to vector<128x256xf32>
    %cst_31 = arith.constant dense<0.000000e+00> : vector<32x256xf32>
    %68 = tpu.matmul %50, %67, %cst_31 {dimension_numbers = #tpu.dot_dimension_numbers<[1], [0], [0], [1], [0, 0, 1, 1], [], []>} : vector<32x128xf32>, vector<128x256xf32>, vector<32x256xf32> -> vector<32x256xf32>
    %69 = arith.addf %64, %68 : vector<32x256xf32>
    %c2_32 = arith.constant 2 : index
    %c0_33 = arith.constant 0 : index
    %c0_34 = arith.constant 0 : index
    %70 = vector.load %arg3[%c2_32, %c0_33, %c0_34] : memref<3x128x256xbf16, #tpu.memory_space<vmem>>, vector<1x128x256xbf16>
    %71 = vector.shape_cast %70 : vector<1x128x256xbf16> to vector<128x256xbf16>
    %72 = arith.extf %71 : vector<128x256xbf16> to vector<128x256xf32>
    %cst_35 = arith.constant dense<0.000000e+00> : vector<32x256xf32>
    %73 = tpu.matmul %60, %72, %cst_35 {dimension_numbers = #tpu.dot_dimension_numbers<[1], [0], [0], [1], [0, 0, 1, 1], [], []>} : vector<32x128xf32>, vector<128x256xf32>, vector<32x256xf32> -> vector<32x256xf32>
    %74 = arith.addf %69, %73 : vector<32x256xf32>
    %c0_36 = arith.constant 0 : index
    %c0_37 = arith.constant 0 : index
    %75 = vector.load %arg4[%c0_36, %c0_37] : memref<1x256xf32, #tpu.memory_space<vmem>>, vector<1x256xf32>
    %76 = vector.broadcast %75 : vector<1x256xf32> to vector<32x256xf32>
    %77 = arith.addf %74, %76 : vector<32x256xf32>
    %cst_38 = arith.constant 0.000000e+00 : f32
    %78 = vector.broadcast %cst_38 : f32 to vector<32x256xf32>
    %79 = arith.maximumf %77, %78 : vector<32x256xf32>
    %c0_39 = arith.constant 0 : index
    %c0_40 = arith.constant 0 : index
    %80 = vector.load %arg5[%c0_39, %c0_40] : memref<2x32xf32, #tpu.memory_space<vmem>>, vector<2x32xf32>
    %cst_41 = arith.constant dense<0.000000e+00> : vector<2x256xf32>
    %81 = tpu.matmul %80, %79, %cst_41 {dimension_numbers = #tpu.dot_dimension_numbers<[1], [0], [0], [1], [0, 0, 1, 1], [], []>} : vector<2x32xf32>, vector<32x256xf32>, vector<2x256xf32> -> vector<2x256xf32>
    %c0_42 = arith.constant 0 : index
    %c0_43 = arith.constant 0 : index
    %82 = vector.load %arg6[%c0_42, %c0_43] : memref<256x2xf32, #tpu.memory_space<vmem>>, vector<256x2xf32>
    %cst_44 = arith.constant dense<0.000000e+00> : vector<2x2xf32>
    %83 = tpu.matmul %81, %82, %cst_44 {dimension_numbers = #tpu.dot_dimension_numbers<[1], [0], [0], [1], [0, 0, 1, 1], [], []>} : vector<2x256xf32>, vector<256x2xf32>, vector<2x2xf32> -> vector<2x2xf32>
    %c0_45 = arith.constant 0 : index
    %c0_46 = arith.constant 0 : index
    %84 = vector.load %arg7[%c0_45, %c0_46] : memref<1x2xf32, #tpu.memory_space<vmem>>, vector<1x2xf32>
    %85 = vector.broadcast %84 : vector<1x2xf32> to vector<2x2xf32>
    %86 = arith.addf %83, %85 : vector<2x2xf32>
    %c0_47 = arith.constant 0 : index
    %c0_48 = arith.constant 0 : index
    %87 = vector.load %arg8[%c0_47, %c0_48] : memref<2x2xf32, #tpu.memory_space<vmem>>, vector<2x2xf32>
    tpu.vector_store %arg8[%c0_47, %c0_48], %86 {strides = array<i32>} : memref<2x2xf32, #tpu.memory_space<vmem>>, vector<2x2xf32>,
    return
  }
}

</mosaic_0001>

<bundles_post_ra>
// kernel: cnn_fixed_predictor_forward.1
= control target key start
LH: loop header
LB: loop body
LE: loop exit
PB: predicated region body
PF: predicated region fallthrough
CT: control target
= control target key end

     0   :  { %vm170_vm0 = vcmask 523264   ;;  %v30_v4 = vlaneseq  ;;  %s2287_s0 = inlined_call_operand.vmem [shape: f32[32,64], index: 0, kind: input, shape index: {}]   ;;  %s2288_s1 = inlined_call_operand.vmem [shape: bf16[3,64,128], index: 1, kind: input, shape index: {}]   ;;  %s2289_s2 = inlined_call_operand.vmem [shape: f32[1,128], index: 2, kind: input, shape index: {}]   ;;  %s2290_s3 = inlined_call_operand.vmem [shape: bf16[3,128,256], index: 3, kind: input, shape index: {}]   ;;  %s2291_s4 = inlined_call_operand.vmem [shape: f32[1,256], index: 4, kind: input, shape index: {}]   ;;  %s2292_s5 = inlined_call_operand.vmem [shape: f32[2,32], index: 5, kind: input, shape index: {}]   ;;  %s2293_s6 = inlined_call_operand.vmem [shape: f32[256,2], index: 6, kind: input, shape index: {}]   ;;  %s2294_s7 = inlined_call_operand.vmem [shape: f32[1,2], index: 7, kind: input, shape index: {}]   ;;  %s2295_s8 = inlined_call_operand.hbm [shape: f32[2,2], index: 8, kind: output, shape index: {}]  }
   0x1   :  { %v1294_v0 = vld [vmem:[%s2288_s1 + $0x20] sm:$0xff]   ;;  %v1295_v1 = vld [vmem:[%s2288_s1 + $0x28] sm:$0xff]   ;;  %v1296_v3 = vld [vmem:[%s2288_s1 + $0x30] sm:$0xff]  }
   0x2   :  { %1440 = vmatprep.subr.bf16.mxu0 %v1294_v0  ;;  %v1849_v2 = vld [vmem:[%s2287_s0] sm:$0xff]  ;;  %v1297_v6 = vld [vmem:[%s2288_s1 + $0x38] sm:$0xff]   ;;  %v1870_v9 = vshrl.u32 %v30_v4, 7  ;;  %v1890_v17 = vld [vmem:[%s2287_s0 + $0x8] sm:$0xff] }
   0x3   :  { %1442 = vmatpush3.bf16.msra.mxu0 %v1294_v0  ;;  %1389 = vmatprep.mubr.msk.f32.mxu0 %vm170_vm0, %v1849_v2  ;;  %v1697_v5 = vld [vmem:[%s2290_s3 + $0x84] ss:$8 sps:$4 sm:$0xff]   ;;  %v1699_v7 = vld [vmem:[%s2290_s3 + $0x80] ss:$8 sps:$4 sm:$0xff]   ;;  %v1868_v8 = vld [vmem:[%s2287_s0 + $0x18] sm:$0xff]  ;;  %v95_v13 = vrot.slane %v1849_v2, 7 }
   0x4   :  { %1444 = vmatprep.subr.bf16.mxu0 %v1295_v1  ;;  %1488 = vmatprep.subr.bf16.mxu1 %v1697_v5  ;;  %v1700_v10 = vld [vmem:[%s2290_s3 + $0x94] ss:$8 sps:$4 sm:$0xff]   ;;  %v1702_v11 = vld [vmem:[%s2290_s3 + $0x90] ss:$8 sps:$4 sm:$0xff]   ;;  %v1703_v12 = vld [vmem:[%s2290_s3 + $0xa4] ss:$8 sps:$4 sm:$0xff]  }
   0x5   :  { %1490 = vmatpush1.bf16.msra.mxu1 %v1699_v7  ;;  %v1244_v14 = vld [vmem:[%s2288_s1] sm:$0xff]   ;;  %v98_v15 = vrot.slane %v1868_v8, 7  ;;  %v39_v16 = vand.u32 15, %v1870_v9  ;;  %vm99_vm1 = vcmp.lt.s32.totalorder %v1870_v9, 1  ;;  %v1291_v19 = vld [vmem:[%s2288_s1 + $0x8] sm:$0xff]   ;;  %v1902_v20 = vld [vmem:[%s2287_s0 + $0x10] sm:$0xff] }
   0x6   :  { %1492 = vmatprep.subr.bf16.mxu1 %v1700_v10  ;;  %v1705_v18 = vld [vmem:[%s2290_s3 + $0xa0] ss:$8 sps:$4 sm:$0xff]   ;;  %v1706_v21 = vld [vmem:[%s2290_s3 + $0xb4] ss:$8 sps:$4 sm:$0xff]   ;;  %v1708_v24 = vld [vmem:[%s2290_s3 + $0xb0] ss:$8 sps:$4 sm:$0xff]  }
   0x7   :  { %1446 = vmatpush3.bf16.msra.mxu0 %v1295_v1  ;;  %vm1907_vm2 = vcmp.eq.s32.totalorder %v39_v16, 0  ;;  %v103_v23 = vsel %vm99_vm1, %v98_v15, %v95_v13  ;;  %v1709_v25 = vld [vmem:[%s2290_s3 + $0xc4] ss:$8 sps:$4 sm:$0xff]   ;;  %v1292_v26 = vld [vmem:[%s2288_s1 + $0x10] sm:$0xff]   ;;  %v1711_v28 = vld [vmem:[%s2290_s3 + $0xc0] ss:$8 sps:$4 sm:$0xff]  }
   0x8   :  { %1448 = vmatprep.subr.bf16.mxu0 %v1296_v3  ;;  %v112_v27 = vsel %vm1907_vm2, 0.0, %v103_v23  ;;  %v33_v29 = vadd.s32 16, %v1870_v9  ;;  %v1712_v30 = vld [vmem:[%s2290_s3 + $0xd4] ss:$8 sps:$4 sm:$0xff]   ;;  %v1714_v32 = vld [vmem:[%s2290_s3 + $0xd0] ss:$8 sps:$4 sm:$0xff]  }
   0x9   :  { %1494 = vmatpush1.bf16.msra.mxu1 %v1702_v11  ;;  %v1293_v31 = vld [vmem:[%s2288_s1 + $0x18] sm:$0xff]   ;;  %v97_v33 = vrot.slane %v1902_v20, 7  ;;  %v1715_v35 = vld [vmem:[%s2290_s3 + $0xe4] ss:$8 sps:$4 sm:$0xff]   ;;  %v96_v36 = vrot.slane %v1890_v17, 7 }
   0xa   :  { %1496 = vmatprep.subr.bf16.mxu1 %v1703_v12  ;;  %v53_v34 = vand.u32 15, %v33_v29 }
   0xb   :  { %1450 = vmatpush3.bf16.msra.mxu0 %v1296_v3 }
   0xc   :  { %1452 = vmatprep.subr.bf16.mxu0 %v1297_v6 }
   0xd   :  { %1498 = vmatpush1.bf16.msra.mxu1 %v1705_v18 }
   0xe   :  { %1500 = vmatprep.subr.bf16.mxu1 %v1706_v21 }
   0xf   :  { %1454 = vmatpush3.bf16.msra.mxu0 %v1297_v6 }
  0x10   :  { %1456 = vmatprep.subr.bf16.mxu0 %v1244_v14 }
  0x11   :  { %1502 = vmatpush1.bf16.msra.mxu1 %v1708_v24 }
  0x12   :  { %1390 = vmatmul.mubr.msk.f32.vlgmr.msra.gmra.mrb[0].mxu0 %vm170_vm0, %v1890_v17  ;;  %1504 = vmatprep.subr.bf16.mxu1 %v1709_v25 }
  0x13   :  { %1458 = vmatpush3.bf16.msra.mxu0 %v1244_v14  ;;  %1392 = vmatprep.mubr.msk.f32.mxu0 %vm170_vm0, %v1902_v20 }
  0x14   :  { %1460 = vmatprep.subr.bf16.mxu0 %v1291_v19 }
  0x15   :  { %1506 = vmatpush1.bf16.msra.mxu1 %v1711_v28 }
  0x16   :  { %1393 = vmatmul.mubr.msk.f32.gmra.mrb[2].mxu0 %vm170_vm0, %v1868_v8  ;;  %1508 = vmatprep.subr.bf16.mxu1 %v1712_v30 }
  0x17   :  { %1462 = vmatpush3.bf16.msra.mxu0 %v1291_v19  ;;  %1411 = vmatprep.mubr.msk.f32.mxu0 %vm170_vm0, %v112_v27 }
  0x18   :  { %1464 = vmatprep.subr.bf16.mxu0 %v1292_v26 }
  0x1b   :  { %1466 = vmatpush3.bf16.msra.mxu0 %v1292_v26 }
  0x1c   :  { %1468 = vmatprep.subr.bf16.mxu0 %v1293_v31 }
  0x1d   :  { %13 = vsyncpa [#allocation3], 0  ;;  %v1298_v37 = vld [vmem:[%s2288_s1 + $0x40] sm:$0xff]   ;;  %vm1954_vm3 = vcmp.eq.s32.totalorder %v53_v34, 0  ;;  %v101_v39 = vsel %vm99_vm1, %v96_v36, %v97_v33  ;;  %1510 = vmatpush1.bf16.msra.mxu1 %v1714_v32  ;;  %v102_v41 = vsel %vm99_vm1, %v95_v13, %v96_v36  ;;  %v116_v42 = vrot.slane %v1849_v2, 1  ;;  %v1299_v45 = vld [vmem:[%s2288_s1 + $0x48] sm:$0xff]  }
  0x1e   :  { %v1717_v40 = vld [vmem:[%s2290_s3 + $0xe0] ss:$8 sps:$4 sm:$0xff]   ;;  %1512 = vmatprep.subr.bf16.mxu1 %v1715_v35  ;;  %v117_v43 = vrot.slane %v1890_v17, 1  ;;  %v114_v44 = vsel %vm1954_vm3, 0.0, %v101_v39  ;;  %vm120_vm4 = vcmp.lt.s32.totalorder %v1870_v9, 7  ;;  %v100_v46 = vsel %vm99_vm1, %v97_v33, %v98_v15  ;;  %v1300_v49 = vld [vmem:[%s2288_s1 + $0x50] sm:$0xff]   ;;  %vm1217_vm7 = vmneg %vm1907_vm2 }
  0x1f   :  { %1470 = vmatpush3.bf16.msra.mxu0 %v1293_v31  ;;  %v32_v48 = vadd.s32 8, %v1870_v9  ;;  %v118_v50 = vrot.slane %v1902_v20, 1  ;;  %v34_v52 = vadd.s32 24, %v1870_v9  ;;  %v1301_v53 = vld [vmem:[%s2288_s1 + $0x58] sm:$0xff]   ;;  %v119_v54 = vrot.slane %v1868_v8, 1  ;;  %vm1219_vm8 = vmneg %vm1954_vm3  ;;  %s1794_s25 = smov [#allocation2]  }
  0x20   :  { %1472 = vmatprep.subr.bf16.mxu0 %v1298_v37  ;;  %v123_v47 = vsel %vm120_vm4, %v116_v42, %v117_v43  ;;  %v1718_v63 = vld [vmem:[%s2290_s3 + $0xf4] ss:$8 sps:$4 sm:$0xff]   ;;  %v1720_v0 = vld [vmem:[%s2290_s3 + $0xf0] ss:$8 sps:$4 sm:$0xff]   ;;  %v1721_v1 = vld [vmem:[%s2290_s3 + $0x4] ss:$8 sps:$4 sm:$0xff]  }
  0x21   :  { %1514 = vmatpush1.bf16.msra.mxu1 %v1717_v40  ;;  %v46_v51 = vand.u32 15, %v32_v48  ;;  %v122_v56 = vsel %vm120_vm4, %v117_v43, %v118_v50  ;;  %v60_v57 = vand.u32 15, %v34_v52  ;;  %v121_v59 = vsel %vm120_vm4, %v118_v50, %v119_v54  ;;  %v1200_v3 = vld [vmem:[%s2289_s2] ss:$0 sm:$0xff]  ;;  %v1724_v13 = vld [vmem:[%s2290_s3 + $0x14] ss:$8 sps:$4 sm:$0xff]  }
  0x22   :  { %1412 = vmatmul.mubr.msk.f32.vlgmr.msra.gmra.mrb[0].mxu0 %vm170_vm0, %v102_v41  ;;  %v124_v61 = vsel %vm120_vm4, %v119_v54, %v116_v42  ;;  %1516 = vmatprep.subr.bf16.mxu1 %v1718_v63  ;;  %v1793_v2 = vmov 0.0   ;;  %v1723_v10 = vld [vmem:[%s2290_s3] ss:$8 sps:$4 sm:$0xff]   ;;  %v1726_v23 = vld [vmem:[%s2290_s3 + $0x10] ss:$8 sps:$4 sm:$0xff]   ;;  %vm972_vm11 = vcmask 261120  }
  0x23   :  { %1474 = vmatpush3.bf16.msra.mxu0 %v1298_v37  ;;  %1414 = vmatprep.mubr.msk.f32.mxu0 %vm170_vm0, %v114_v44  ;;  %vm1993_vm5 = vcmp.eq.s32.totalorder %v46_v51, 15  ;;  %vm2003_vm6 = vcmp.eq.s32.totalorder %v60_v57, 15  ;;  %v1727_v25 = vld [vmem:[%s2290_s3 + $0x24] ss:$8 sps:$4 sm:$0xff]   ;;  %v1729_v32 = vld [vmem:[%s2290_s3 + $0x20] ss:$8 sps:$4 sm:$0xff]  }
  0x24   :  { %1476 = vmatprep.subr.bf16.mxu0 %v1299_v45  ;;  %v134_v58 = vsel %vm1993_vm5, 0.0, %v122_v56  ;;  %v136_v62 = vsel %vm2003_vm6, 0.0, %v124_v61  ;;  %683 = vmatprep.mubr.f32.mxu1 %v1793_v2  ;;  %v1730_v35 = vld [vmem:[%s2290_s3 + $0x34] ss:$8 sps:$4 sm:$0xff]   ;;  %v1732_v41 = vld [vmem:[%s2290_s3 + $0x30] ss:$8 sps:$4 sm:$0xff]   ;;  %vm1237_vm9 = vmneg %vm1993_vm5 }
  0x25   :  { %1518 = vmatpush1.bf16.msra.mxu1 %v1720_v0  ;;  %v1733_v42 = vld [vmem:[%s2290_s3 + $0x44] ss:$8 sps:$4 sm:$0xff]   ;;  %v1735_v43 = vld [vmem:[%s2290_s3 + $0x40] ss:$8 sps:$4 sm:$0xff]   ;;  %v1736_v44 = vld [vmem:[%s2290_s3 + $0x54] ss:$8 sps:$4 sm:$0xff]  }
  0x26   :  { %1415 = vmatmul.mubr.msk.f32.gmra.mrb[2].mxu0 %vm170_vm0, %v100_v46  ;;  %1520 = vmatprep.subr.bf16.mxu1 %v1721_v1  ;;  %v1739_v46 = vld [vmem:[%s2290_s3 + $0x64] ss:$8 sps:$4 sm:$0xff]   ;;  %v1742_v48 = vld [vmem:[%s2290_s3 + $0x74] ss:$8 sps:$4 sm:$0xff]   ;;  %v1747_v51 = vld [vmem:[%s2290_s3 + $0x100] ss:$8 sps:$4 sm:$0xff]  }
  0x27   :  { %1478 = vmatpush3.bf16.msra.mxu0 %v1299_v45  ;;  %1433 = vmatprep.mubr.msk.f32.mxu0 %vm170_vm0, %v123_v47  ;;  %v1738_v45 = vld [vmem:[%s2290_s3 + $0x50] ss:$8 sps:$4 sm:$0xff]   ;;  %v1741_v47 = vld [vmem:[%s2290_s3 + $0x60] ss:$8 sps:$4 sm:$0xff]   ;;  %v1745_v50 = vld [vmem:[%s2290_s3 + $0x104] ss:$8 sps:$4 sm:$0xff]  }
  0x28   :  { %1480 = vmatprep.subr.bf16.mxu0 %v1300_v49  ;;  %v1748_v52 = vld [vmem:[%s2290_s3 + $0x114] ss:$8 sps:$4 sm:$0xff]   ;;  %v1751_v22 = vld [vmem:[%s2290_s3 + $0x124] ss:$8 sps:$4 sm:$0xff]   ;;  %v1753_v54 = vld [vmem:[%s2290_s3 + $0x120] ss:$8 sps:$4 sm:$0xff]  }
  0x29   :  { %v1754_v56 = vld [vmem:[%s2290_s3 + $0x134] ss:$8 sps:$4 sm:$0xff]   ;;  %v1756_v57 = vld [vmem:[%s2290_s3 + $0x130] ss:$8 sps:$4 sm:$0xff]   ;;  %v1757_v38 = vld [vmem:[%s2290_s3 + $0x144] ss:$8 sps:$4 sm:$0xff]  }
  0x2a   :  { %v1762_v61 = vld [vmem:[%s2290_s3 + $0x150] ss:$8 sps:$4 sm:$0xff]   ;;  %v1765_v63 = vld [vmem:[%s2290_s3 + $0x160] ss:$8 sps:$4 sm:$0xff]   ;;  %v1766_v0 = vld [vmem:[%s2290_s3 + $0x174] ss:$8 sps:$4 sm:$0xff]  }
  0x2b   :  { %1482 = vmatpush3.bf16.msra.mxu0 %v1300_v49  ;;  %v1744_v49 = vld [vmem:[%s2290_s3 + $0x70] ss:$8 sps:$4 sm:$0xff]   ;;  %vm1239_vm10 = vmneg %vm2003_vm6  ;;  %v943_v55 = vld [vmem:[%s2291_s4] sm:$0x3]  ;;  %s1164_s26 = sshll.u32 %s1794_s25, 4  ;;  %vm1156_vm12 = vcmask 9216   ;;  %s1165_s26 = int_to_ptr.vmem [resolvable:$true] %s1164_s26 }
  0x2c   :  { %1484 = vmatprep.subr.bf16.mxu0 %v1301_v53  ;;  %v1768_v1 = vld [vmem:[%s2290_s3 + $0x170] ss:$8 sps:$4 sm:$0xff]   ;;  %p1774_p1 = scmp.lt.s32.totalorder %s1165_s26, %s1165_s26 }
  0x2f   :  { %1486 = vmatpush3.bf16.msra.mxu0 %v1301_v53  ;;  %v1750_v53 = vld [vmem:[%s2290_s3 + $0x110] ss:$8 sps:$4 sm:$0xff]  }
  0x32   :  { %1434 = vmatmul.mubr.msk.f32.vlgmr.msra.gmra.mrb[0].mxu0 %vm170_vm0, %v134_v58  ;;  %v1759_v58 = vld [vmem:[%s2290_s3 + $0x140] ss:$8 sps:$4 sm:$0xff]  }
  0x33   :  { %1436 = vmatprep.mubr.msk.f32.mxu0 %vm170_vm0, %v121_v59  ;;  %v1760_v59 = vld [vmem:[%s2290_s3 + $0x154] ss:$8 sps:$4 sm:$0xff]  }
  0x36   :  { %1437 = vmatmul.mubr.msk.f32.gmra.mrb[2].mxu0 %vm170_vm0, %v136_v62  ;;  %v1763_v62 = vld [vmem:[%s2290_s3 + $0x164] ss:$8 sps:$4 sm:$0xff]  }
  0x37   :  { %1040 = vmatprep.mubr.f32.mxu0 %v1793_v2 }
 0x105   :  { %v1435_v4 = vpop.f32.mrb[0].mxu0 }
 0x106   :  { %v491_v5 = vadd.f32 %v1435_v4, %v1200_v3  ;;  %v460_v6 = vpop.f32.mrb[1].mxu0  ;;  %v951_v4 = vsub.s32 1, %v1870_v9 }
 0x107   :  { %v490_v7 = vadd.f32 %v1200_v3, %v460_v6 }
 0x108   :  { %v495_v8 = vmax.f32 %v491_v5, 0.0 }
 0x109   :  { %v494_v11 = vmax.f32 %v490_v7, 0.0  ;;  %v1438_v12 = vpop.f32.mrb[2].mxu0  ;;  %v952_v7 = vrot.slane %v943_v55, %v951_v4 }
 0x10a   :  { %v499_v14 = vrot.slane %v495_v8, 7  ;;  %v511_v15 = vrot.slane %v495_v8, 1  ;;  %v493_v16 = vadd.f32 %v1438_v12, %v1200_v3  ;;  %v470_v17 = vpop.f32.mrb[3].mxu0 }
 0x10b   :  { %v498_v18 = vrot.slane %v494_v11, 7  ;;  %v510_v19 = vrot.slane %v494_v11, 1  ;;  %v492_v20 = vadd.f32 %v1200_v3, %v470_v17  ;;  %684 = vmatmul.mubr.f32.vlgmr.msra.gmra.mrb[0].mxu1 %v494_v11  ;;  %v947_v3 = vsub.s32 0, %v1870_v9 }
 0x10c   :  { %v497_v21 = vmax.f32 %v493_v16, 0.0  ;;  %1522 = vmatpush1.bf16.msra.mxu1 %v1723_v10  ;;  %689 = vmatprep.mubr.f32.mxu1 %v1793_v2 }
 0x10d   :  { %v496_v24 = vmax.f32 %v492_v20, 0.0  ;;  %1524 = vmatprep.subr.bf16.mxu1 %v1724_v13  ;;  %v504_v26 = vsel %vm99_vm1, %v498_v18, %v499_v14  ;;  %v2045_v27 = vsel %vm120_vm4, %v510_v19, %v511_v15  ;;  %v948_v5 = vrot.slane %v943_v55, %v947_v3  ;;  %v1074_v3 = vld [vmem:[%s2293_s6 + $0xd8] sm:$0xff] }
 0x10e   :  { %v501_v28 = vrot.slane %v497_v21, 7  ;;  %v513_v29 = vrot.slane %v497_v21, 1 }
 0x10f   :  { %v500_v30 = vrot.slane %v496_v24, 7  ;;  %v512_v31 = vrot.slane %v496_v24, 1  ;;  %690 = vmatmul.mubr.f32.gmra.mrb[2].mxu1 %v495_v8 }
 0x110   :  { %1526 = vmatpush1.bf16.msra.mxu1 %v1726_v23  ;;  %695 = vmatprep.mubr.f32.mxu1 %v1793_v2  ;;  %v505_v33 = vsel %vm99_vm1, %v501_v28, %v498_v18  ;;  %v2055_v34 = vsel %vm120_vm4, %v513_v29, %v510_v19 }
 0x111   :  { %1528 = vmatprep.subr.bf16.mxu1 %v1727_v25  ;;  %v503_v36 = vsel %vm99_vm1, %v499_v14, %v500_v30  ;;  %v502_v37 = vsel %vm99_vm1, %v500_v30, %v501_v28  ;;  %v2066_v39 = vsel %vm120_vm4, %v511_v15, %v512_v31  ;;  %v2070_v40 = vsel %vm120_vm4, %v512_v31, %v513_v29  ;;  %v1063_v30 = vld [vmem:[%s2293_s6 + $0x80] sm:$0xff]  ;;  %v1064_v31 = vld [vmem:[%s2293_s6 + $0x88] sm:$0xff] }
 0x113   :  { %696 = vmatmul.mubr.f32.gmra.mrb[4].mxu1 %v496_v24 }
 0x114   :  { %1530 = vmatpush1.bf16.msra.mxu1 %v1729_v32  ;;  %701 = vmatprep.mubr.f32.mxu1 %v1793_v2 }
 0x115   :  { %1532 = vmatprep.subr.bf16.mxu1 %v1730_v35 }
 0x117   :  { %702 = vmatmul.mubr.f32.gmra.mrb[6].mxu1 %v497_v21 }
 0x118   :  { %1534 = vmatpush1.bf16.msra.mxu1 %v1732_v41  ;;  %772 = vmatprep.mubr.f32.mxu1 %v1793_v2  ;;  %v1066_v41 = vld [vmem:[%s2293_s6 + $0x98] sm:$0xff] }
 0x119   :  { %1536 = vmatprep.subr.bf16.mxu1 %v1733_v42  ;;  %v971_v42 = vld [vmem:[%s2292_s5] sm:$0x3] }
 0x11c   :  { %1538 = vmatpush1.bf16.msra.mxu1 %v1735_v43 }
 0x11d   :  { %1540 = vmatprep.subr.bf16.mxu1 %v1736_v44 }
 0x120   :  { %1542 = vmatpush1.bf16.msra.mxu1 %v1738_v45  ;;  %v1049_v45 = vld [vmem:[%s2293_s6 + $0x10] sm:$0xff] }
 0x121   :  { %1544 = vmatprep.subr.bf16.mxu1 %v1739_v46  ;;  %v1050_v46 = vld [vmem:[%s2293_s6 + $0x18] sm:$0xff] }
 0x124   :  { %1546 = vmatpush1.bf16.msra.mxu1 %v1741_v47  ;;  %v1067_v47 = vld [vmem:[%s2293_s6 + $0xa0] sm:$0xff] }
 0x125   :  { %1548 = vmatprep.subr.bf16.mxu1 %v1742_v48  ;;  %v1068_v48 = vld [vmem:[%s2293_s6 + $0xa8] sm:$0xff] }
 0x128   :  { %1550 = vmatpush1.bf16.msra.mxu1 %v1744_v49  ;;  %v1597_v49 = vpack.c.bf16 %v1050_v46, %v1049_v45 }
 0x129   :  { %1552 = vmatprep.subr.bf16.mxu1 %v1745_v50  ;;  %v1599_v50 = vpack.c.bf16 %v1068_v48, %v1067_v47 }
 0x12b   :  { %1218 = vmatmul.mubr.msk.f32.vlgmr.msra.gmra.mrb[0].mxu1 %vm1217_vm7, %v505_v33 }
 0x12c   :  { %1554 = vmatpush1.bf16.msra.mxu1 %v1747_v51  ;;  %778 = vmatprep.mubr.f32.mxu1 %v1793_v2  ;;  %v1051_v51 = vld [vmem:[%s2293_s6 + $0x20] sm:$0xff] }
 0x12d   :  { %1556 = vmatprep.subr.bf16.mxu1 %v1748_v52  ;;  %v1052_v52 = vld [vmem:[%s2293_s6 + $0x28] sm:$0xff] }
 0x12f   :  { %779 = vmatmul.mubr.f32.gmra.mrb[2].mxu1 %v504_v26 }
 0x130   :  { %1558 = vmatpush1.bf16.msra.mxu1 %v1750_v53  ;;  %784 = vmatprep.mubr.f32.mxu1 %v1793_v2  ;;  %v1069_v53 = vld [vmem:[%s2293_s6 + $0xb0] sm:$0xff] }
 0x131   :  { %1560 = vmatprep.subr.bf16.mxu1 %v1751_v22  ;;  %v1070_v22 = vld [vmem:[%s2293_s6 + $0xb8] sm:$0xff] }
 0x133   :  { %1220 = vmatmul.mubr.msk.f32.gmra.mrb[4].mxu1 %vm1219_vm8, %v503_v36  ;;  %v1591_v36 = vpack.c.bf16 %v1064_v31, %v1063_v30 }
 0x134   :  { %1562 = vmatpush1.bf16.msra.mxu1 %v1753_v54  ;;  %790 = vmatprep.mubr.f32.mxu1 %v1793_v2  ;;  %v1601_v54 = vpack.c.bf16 %v1052_v52, %v1051_v51 }
 0x135   :  { %1564 = vmatprep.subr.bf16.mxu1 %v1754_v56  ;;  %v1603_v56 = vpack.c.bf16 %v1070_v22, %v1069_v53 }
 0x137   :  { %791 = vmatmul.mubr.f32.gmra.mrb[6].mxu1 %v502_v37  ;;  %v1047_v37 = vld [vmem:[%s2293_s6] sm:$0xff] }
 0x138   :  { %1566 = vmatpush1.bf16.msra.mxu1 %v1756_v57  ;;  %910 = vmatprep.mubr.f32.mxu1 %v1793_v2  ;;  %v1053_v57 = vld [vmem:[%s2293_s6 + $0x30] sm:$0xff] }
 0x139   :  { %1568 = vmatprep.subr.bf16.mxu1 %v1757_v38  ;;  %v1054_v38 = vld [vmem:[%s2293_s6 + $0x38] sm:$0xff] }
 0x13c   :  { %1570 = vmatpush1.bf16.msra.mxu1 %v1759_v58  ;;  %v1071_v58 = vld [vmem:[%s2293_s6 + $0xc0] sm:$0xff] }
 0x13d   :  { %1572 = vmatprep.subr.bf16.mxu1 %v1760_v59  ;;  %v1072_v59 = vld [vmem:[%s2293_s6 + $0xc8] sm:$0xff] }
 0x140   :  { %1574 = vmatpush1.bf16.msra.mxu1 %v1762_v61  ;;  %v1605_v61 = vpack.c.bf16 %v1054_v38, %v1053_v57 }
 0x141   :  { %1576 = vmatprep.subr.bf16.mxu1 %v1763_v62  ;;  %v1607_v62 = vpack.c.bf16 %v1072_v59, %v1071_v58 }
 0x144   :  { %1578 = vmatpush1.bf16.msra.mxu1 %v1765_v63  ;;  %v1055_v63 = vld [vmem:[%s2293_s6 + $0x40] sm:$0xff] }
 0x145   :  { %1580 = vmatprep.subr.bf16.mxu1 %v1766_v0  ;;  %v1056_v0 = vld [vmem:[%s2293_s6 + $0x48] sm:$0xff] }
 0x146   :  { %v1609_v55 = vpack.c.bf16 %v1056_v0, %v1055_v63 }
 0x148   :  { %1582 = vmatpush1.bf16.msra.mxu1 %v1768_v1  ;;  %v1073_v1 = vld [vmem:[%s2293_s6 + $0xd0] sm:$0xff] }
 0x149   :  { %v1611_v4 = vpack.c.bf16 %v1074_v3, %v1073_v1 }
 0x14b   :  { %911 = vmatmul.mubr.f32.vlgmr.msra.gmra.mrb[0].mxu1 %v2045_v27 }
 0x14c   :  { %916 = vmatprep.mubr.f32.mxu1 %v1793_v2 }
 0x14f   :  { %1238 = vmatmul.mubr.msk.f32.gmra.mrb[2].mxu1 %vm1237_vm9, %v2066_v39  ;;  %v1048_v39 = vld [vmem:[%s2293_s6 + $0x8] sm:$0xff] }
 0x150   :  { %922 = vmatprep.mubr.f32.mxu1 %v1793_v2  ;;  %v1593_v43 = vpack.c.bf16 %v1048_v39, %v1047_v37 }
 0x153   :  { %923 = vmatmul.mubr.f32.gmra.mrb[4].mxu1 %v2070_v40  ;;  %v1065_v40 = vld [vmem:[%s2293_s6 + $0x90] sm:$0xff] }
 0x154   :  { %928 = vmatprep.mubr.f32.mxu1 %v1793_v2  ;;  %v1595_v44 = vpack.c.bf16 %v1066_v41, %v1065_v40 }
 0x157   :  { %1240 = vmatmul.mubr.msk.f32.gmra.mrb[6].mxu1 %vm1239_vm10, %v2055_v34 }
 0x21e   :  { %v912_v6 = vpop.f32.mrb[0].mxu1 }
 0x21f   :  { %v914_v8 = vpop.f32.mrb[1].mxu1  ;;  %v955_v10 = vadd.f32 %v948_v5, %v912_v6  ;;  %v1058_v6 = vld [vmem:[%s2293_s6 + $0x58] sm:$0xff] }
 0x220   :  { %v956_v11 = vadd.f32 %v952_v7, %v914_v8  ;;  %v1076_v8 = vld [vmem:[%s2293_s6 + $0xe8] sm:$0xff] }
 0x221   :  { %v963_v14 = vmax.f32 %v955_v10, 0.0 }
 0x222   :  { %v918_v2 = vpop.f32.mrb[2].mxu1  ;;  %v964_v16 = vmax.f32 %v956_v11, 0.0 }
 0x223   :  { %v957_v12 = vadd.f32 %v948_v5, %v918_v2  ;;  %v920_v60 = vpop.f32.mrb[3].mxu1  ;;  %v1059_v2 = vld [vmem:[%s2293_s6 + $0x60] sm:$0xff] }
 0x224   :  { %v958_v13 = vadd.f32 %v952_v7, %v920_v60  ;;  %v1077_v60 = vld [vmem:[%s2293_s6 + $0xf0] sm:$0xff] }
 0x225   :  { %v965_v15 = vmax.f32 %v957_v12, 0.0  ;;  %v1060_v12 = vld [vmem:[%s2293_s6 + $0x68] sm:$0xff] }
 0x226   :  { %v966_v17 = vmax.f32 %v958_v13, 0.0  ;;  %v924_v18 = vpop.f32.mrb[4].mxu1  ;;  %v1078_v13 = vld [vmem:[%s2293_s6 + $0xf8] sm:$0xff] }
 0x227   :  { %v1585_v19 = vpack.c.bf16 %v965_v15, %v963_v14  ;;  %v926_v20 = vpop.f32.mrb[5].mxu1  ;;  %v959_v23 = vadd.f32 %v948_v5, %v924_v18  ;;  %v1617_v14 = vpack.c.bf16 %v1060_v12, %v1059_v2  ;;  %v1619_v15 = vpack.c.bf16 %v1078_v13, %v1077_v60 }
 0x228   :  { %v1583_v21 = vpack.c.bf16 %v966_v17, %v964_v16  ;;  %v960_v9 = vadd.f32 %v952_v7, %v926_v20  ;;  %v1061_v16 = vld [vmem:[%s2293_s6 + $0x70] sm:$0xff]  ;;  %v1062_v17 = vld [vmem:[%s2293_s6 + $0x78] sm:$0xff] }
 0x229   :  { %v967_v28 = vmax.f32 %v959_v23, 0.0  ;;  %v1621_v18 = vpack.c.bf16 %v1062_v17, %v1061_v16  ;;  %v1242_v23 = vld [vmem:[%s2294_s7] ss:$0 sm:$0xff] }
 0x22a   :  { %v930_v24 = vpop.f32.mrb[6].mxu1  ;;  %1584 = vmatprep.subr.bf16.mxu0 %v1583_v21  ;;  %v968_v32 = vmax.f32 %v960_v9, 0.0 }
 0x22b   :  { %v961_v25 = vadd.f32 %v948_v5, %v930_v24  ;;  %v932_v26 = vpop.f32.mrb[7].mxu1  ;;  %1586 = vmatpush1.bf16.msra.mxu0 %v1585_v19  ;;  %v1057_v5 = vld [vmem:[%s2293_s6 + $0x50] sm:$0xff] }
 0x22c   :  { %v962_v27 = vadd.f32 %v952_v7, %v932_v26  ;;  %v1075_v7 = vld [vmem:[%s2293_s6 + $0xe0] sm:$0xff]  ;;  %v1613_v10 = vpack.c.bf16 %v1058_v6, %v1057_v5  ;;  %s1769_s6 = scalar_lea.vmem %s1165_s26, 32 }
 0x22d   :  { %v969_v29 = vmax.f32 %v961_v25, 0.0  ;;  %v1615_v11 = vpack.c.bf16 %v1076_v8, %v1075_v7  ;;  %p1770_p0 = scmp.ne.s32.totalorder %s1165_s26, %s1769_s6  ;;  %p1775_p2 = scmp.lt.s32.totalorder %s1769_s6, %s1769_s6 }
 0x22e   :  { %v970_v33 = vmax.f32 %v962_v27, 0.0 }
 0x22f   :  { %v1589_v34 = vpack.c.bf16 %v969_v29, %v967_v28  ;;  %p1776_p3 = por %p1775_p2, %p1774_p1 }
 0x230   :  { %v1587_v35 = vpack.c.bf16 %v970_v33, %v968_v32 }
 0x231   :  { %p1777_p4 = pnand %p1776_p3, %p1770_p0 }
 0x232   :  { %1588 = vmatprep.subr.bf16.mxu0 %v1587_v35 }
 0x233   :  { %1590 = vmatpush1.bf16.msra.mxu0 %v1589_v34 }
 0x234   :  { %1592 = vmatprep.subr.bf16.mxu0 %v1591_v36 }
 0x236   :  { %1241 = vmatmul.mubr.msk.f32.vlgmr.msra.gmra.mrb[4].mxu0 %vm972_vm11, %v971_v42 }
 0x237   :  { %1594 = vmatpush3.bf16.msra.mxu0 %v1593_v43 }
 0x238   :  { %1596 = vmatprep.subr.bf16.mxu0 %v1595_v44 }
 0x23b   :  { %1598 = vmatpush3.bf16.msra.mxu0 %v1597_v49 }
 0x23c   :  { %1600 = vmatprep.subr.bf16.mxu0 %v1599_v50 }
 0x23f   :  { %1602 = vmatpush3.bf16.msra.mxu0 %v1601_v54 }
 0x240   :  { %1604 = vmatprep.subr.bf16.mxu0 %v1603_v56 }
 0x243   :  { %1606 = vmatpush3.bf16.msra.mxu0 %v1605_v61 }
 0x244   :  { %1608 = vmatprep.subr.bf16.mxu0 %v1607_v62 }
 0x247   :  { %1610 = vmatpush3.bf16.msra.mxu0 %v1609_v55 }
 0x248   :  { %1612 = vmatprep.subr.bf16.mxu0 %v1611_v4 }
 0x24b   :  { %1614 = vmatpush3.bf16.msra.mxu0 %v1613_v10 }
 0x24c   :  { %1616 = vmatprep.subr.bf16.mxu0 %v1615_v11 }
 0x24f   :  { %1618 = vmatpush3.bf16.msra.mxu0 %v1617_v14 }
 0x250   :  { %1620 = vmatprep.subr.bf16.mxu0 %v1619_v15 }
 0x253   :  { %1622 = vmatpush3.bf16.msra.mxu0 %v1621_v18 }
 0x309   :  { %v1042_v19 = vpop.f32.mrb[4].mxu0 }
 0x30a   :  { %v1044_v20 = vpop.f32.mrb[5].mxu0 }
 0x30b   :  { %1150 = vmatprep.mubr.f32.mxu0 %v1044_v20 }
 0x30c   :  { %1151 = vmatmul.mubr.f32.vlgmr.msra.gmra.mrb[6].mxu0 %v1042_v19 }
 0x3df   :  { %v1370_v21 = vpop.f32.mrb[6].mxu0 }
 0x3e0   :  { %v1371_v9 = vpop.f32.mrb[7].mxu0 }
 0x3e1   :  { %v1372_v24 = vadd.f32 %v1371_v9, %v1370_v21 }
 0x3e3   :  { %v1153_v25 = vadd.f32 %v1372_v24, %v1242_v23 }
 0x3e5   :  { %1157 = vst.msk [vmem:[#allocation2] sm:$0x3] %vm1156_vm12, %v1153_v25 }
 0x3e6   :  { %1780 = shalt.err (!%p1777_p4)
}
 0x3e7   :  { %s1781_s29 = scalar_lea.hbm %s2295_s8, 32 }
 0x3e8   :  { %p1782_p5 = scmp.ne.s32.totalorder %s2295_s8, %s1781_s29  ;;  %p1785_p6 = scmp.lt.u32.totalorder %s1781_s29, %s2295_s8 }
 0x3ea   :  { %p1787_p7 = pnand %p1785_p6, %p1782_p5 }
 0x3ec   :  { %1790 = shalt.err (!%p1787_p7)
}
 0x3ed   :  { %1167 = dma.vmem_to_hbm [thread:$0]  %s1165_s26, 32, %s2295_s8, [#allocation3]  }
 0x3ee   :  { %1791 = dma.done.wait [#allocation3], 32  }
 0x3ef   :  { %1792 = vsyncadd [#allocation3], 4294967264 }
 0x3f0   :  { %1171 = vsyncpa [#allocation3], 1 }

</bundles_post_ra>
